<compile_context>
chip_gen: v7x
topology: tpu7x:2x2x1
jax: 0.10.0
libtpu: 0.0.40
codegen_flags: <defaults>
</compile_context>

<pallas_src>
import jax
import jax.numpy as jnp
import numpy as np
from jax.experimental import pallas as pl
from jax.experimental.pallas import tpu as pltpu


def _cdiv(a, b):
    return -(-a // b)


def deconv_kernel(col_ref, wpat_ref, lh_ref, hl_ref, hh_ref, o_ref):
    # col_ref:  (W, 4W)    channel-independent 0/1 selector,
    #                      col[j, a*2W + 2j + b] = 1
    # wpat_ref: (Cb, 1, 4W) per-channel tap pattern, wpat[c, 0, a*2W+2j+b] = w[c,a,b]
    # lh/hl/hh: (Cb, H, W)  input planes (batch dim squeezed by BlockSpec)
    # o_ref:    (Cb, H, 4W) == (Cb, 2H, 2W) reinterpreted row-major
    cb, h, w = lh_ref.shape
    x = lh_ref[...] + hl_ref[...] + hh_ref[...]                  # (Cb, H, W), input dtype
    # One large MXU matmul: duplicate + position columns (exact 0/1 selector).
    y = jnp.dot(x.reshape(cb * h, w), col_ref[...],
                preferred_element_type=jnp.float32)              # (Cb*H, 4W) f32
    # Apply the per-channel 2x2 taps with a VPU broadcast multiply (f32).
    out = y.reshape(cb, h, 4 * w) * wpat_ref[...]                # (Cb, H, 4W)
    o_ref[...] = out.astype(o_ref.dtype)                         # one dense store


def _vmem_budget():
    """Generation-aware scoped-VMEM limit and tile budget (bytes)."""
    try:
        info = pltpu.get_tpu_info()
        phys = int(getattr(info, "vmem_capacity_bytes", 0)) or 64 * 1024 * 1024
    except Exception:
        phys = 64 * 1024 * 1024          # conservative fallback (v7x per-core)
    # v5e/v6e (128 MiB phys) -> 96 MiB limit; v7x (64 MiB phys) -> 48 MiB limit.
    limit = min(int(phys * 0.75), 112 * 1024 * 1024)
    budget = int(limit * 0.65)           # headroom for compiler scratch / misc
    return limit, budget


def _pick_channel_block(C, N, H, W, in_sz, out_sz, budget_bytes):
    """Channel-block size: fits the VMEM budget, keeps enough grid steps."""
    per_ch = (
        2 * 3 * H * W * in_sz      # lh/hl/hh blocks (double-buffered)
        + 2 * 4 * H * W * out_sz   # output block (double-buffered)
        + 2 * 4 * H * W * 4        # f32 temporaries: y and tap-scaled result
        + 1 * H * W * in_sz        # x = lh + hl + hh temporary
        + 2 * 4 * W * 4            # wpat rows (double-buffered)
    )
    fixed = 2 * W * 4 * W * in_sz  # column selector (resident, 2 buffers)
    cap = max(1, (budget_bytes - fixed) // per_ch)
    cb = max(1, min(C, cap))
    # Keep >= 8 grid steps (2 TensorCores on v7x want several parallel steps).
    min_steps = 8
    if N * _cdiv(C, cb) < min_steps:
        cb = max(1, C // _cdiv(min_steps, N))
    return cb


def deconv_block(lh, hl, hh, weight):
    """Depthwise ConvTranspose2d(k=2, s=2, groups=C) applied to LH + HL + HH.

    weight: (C, 1, 2, 2) -- PyTorch ConvTranspose2d weight with groups == C.
    """
    N, C, H, W = lh.shape
    assert hl.shape == lh.shape and hh.shape == lh.shape
    assert weight.shape == (C, 1, 2, 2), weight.shape

    out_dtype = lh.dtype
    in_sz = jnp.dtype(lh.dtype).itemsize
    out_sz = jnp.dtype(out_dtype).itemsize

    # Hoisted constants (built once, tiny):
    #   col[j, a*2W + 2j + b] = 1          (channel-independent 0/1 selector)
    #   wpat[c, 0, a*2W + 2j + b] = w[c, a, b]
    w = weight.reshape(C, 2, 2).astype(jnp.float32)
    q = np.arange(4 * W)
    a_idx = q // (2 * W)
    b_idx = q % 2
    wpat = w[:, a_idx, b_idx].reshape(C, 1, 4 * W)                 # (C, 1, 4W) f32
    j_of_q = (q % (2 * W)) // 2
    col = jnp.asarray((j_of_q[None, :] == np.arange(W)[:, None]).astype(np.float32),
                      dtype=lh.dtype)                              # (W, 4W)

    vmem_limit, budget = _vmem_budget()
    Cb = _pick_channel_block(C, N, H, W, in_sz, out_sz, budget)
    num_cb = _cdiv(C, Cb)

    col_spec = pl.BlockSpec((W, 4 * W), lambda cb, n: (0, 0))
    wpat_spec = pl.BlockSpec((Cb, 1, 4 * W), lambda cb, n: (cb, 0, 0))
    x_spec = pl.BlockSpec((None, Cb, H, W), lambda cb, n: (n, cb, 0, 0))
    o_spec = pl.BlockSpec((None, Cb, H, 4 * W), lambda cb, n: (n, cb, 0, 0))

    out4 = pl.pallas_call(
        deconv_kernel,
        out_shape=jax.ShapeDtypeStruct((N, C, H, 4 * W), out_dtype),
        grid=(num_cb, N),  # N is the fast axis -> col/wpat blocks stay resident
        in_specs=[col_spec, wpat_spec, x_spec, x_spec, x_spec],
        out_specs=o_spec,
        compiler_params=pltpu.CompilerParams(
            dimension_semantics=("parallel", "parallel"),
            vmem_limit_bytes=vmem_limit),
    )(col, wpat, lh, hl, hh)

    # (N, C, H, 4W) and (N, C, 2H, 2W) are the same row-major bytes.
    return out4.reshape(N, C, 2 * H, 2 * W)


def deconv_block_ref(lh, hl, hh, weight):
    """Pure-JAX reference: depthwise ConvTranspose2d(k=2, s=2, groups=C)."""
    x = lh + hl + hh
    N, C, H, W = x.shape
    out = jnp.einsum('nchw,cab->nchawb', x, weight[:, 0])
    return out.reshape(N, C, 2 * H, 2 * W)


if __name__ == "__main__":
    key = jax.random.PRNGKey(0)
    k_ll, k_lh, k_hl, k_hh, k_w = jax.random.split(key, 5)

    N, C, H, W = 2, 4, 16, 16  # in_channels == out_channels == C (groups == C)

    LL = jax.random.normal(k_ll, (N, C, H, W), dtype=jnp.float32)  # unused by forward
    LH = jax.random.normal(k_lh, (N, C, H, W), dtype=jnp.float32)
    HL = jax.random.normal(k_hl, (N, C, H, W), dtype=jnp.float32)
    HH = jax.random.normal(k_hh, (N, C, H, W), dtype=jnp.float32)

    # ConvTranspose2d weight, shape (in_ch, out_ch // groups, kH, kW) = (C, 1, 2, 2)
    bound = 1.0 / np.sqrt(1 * 2 * 2)
    weight = jax.random.uniform(k_w, (C, 1, 2, 2), dtype=jnp.float32,
                                minval=-bound, maxval=bound)

    out = deconv_block(LH, HL, HH, weight)
    out = jax.block_until_ready(out)

    ref = deconv_block_ref(LH, HL, HH, weight)
    assert out.shape == (N, C, 2 * H, 2 * W)
    assert np.allclose(np.asarray(out), np.asarray(ref), atol=1e-5, rtol=1e-5)

    print("KERNEL_OK")
</pallas_src>

<mosaic_0001>
module attributes {stable_mosaic.version = 11 : i64} {
  func.func @deconv_kernel(%arg0: i32, %arg1: i32, %arg2: memref<16x64xf32, #tpu.memory_space<vmem>>, %arg3: memref<1x1x64xf32, #tpu.memory_space<vmem>>, %arg4: memref<1x1x16x16xf32, #tpu.memory_space<vmem>>, %arg5: memref<1x1x16x16xf32, #tpu.memory_space<vmem>>, %arg6: memref<1x1x16x16xf32, #tpu.memory_space<vmem>>, %arg7: memref<1x1x16x64xf32, #tpu.memory_space<vmem>>) attributes {dimension_semantics = [#tpu.dimension_semantics<parallel>, #tpu.dimension_semantics<parallel>], iteration_bounds = array<i64: 4, 2>, scalar_prefetch = 0 : i64, scratch_operands = 0 : i64, tpu.core_type = #tpu.core_type<tc>, window_params = [{pipeline_mode = #tpu.pipeline_mode<synchronous>, transform_indices = @transform_0, window_bounds = array<i64: 16, 64>}, {transform_indices = @transform_1, window_bounds = array<i64: 1, 1, 64>}, {transform_indices = @transform_2, window_bounds = array<i64: 1, 1, 16, 16>}, {transform_indices = @transform_3, window_bounds = array<i64: 1, 1, 16, 16>}, {transform_indices = @transform_4, window_bounds = array<i64: 1, 1, 16, 16>}, {transform_indices = @transform_5, window_bounds = array<i64: 1, 1, 16, 64>}]} {
    %c0 = arith.constant 0 : index
    %c0_0 = arith.constant 0 : index
    %c0_1 = arith.constant 0 : index
    %c0_2 = arith.constant 0 : index
    %0 = vector.load %arg4[%c0, %c0_0, %c0_1, %c0_2] : memref<1x1x16x16xf32, #tpu.memory_space<vmem>>, vector<1x1x16x16xf32>
    %1 = vector.shape_cast %0 : vector<1x1x16x16xf32> to vector<1x16x16xf32>
    %c0_3 = arith.constant 0 : index
    %c0_4 = arith.constant 0 : index
    %c0_5 = arith.constant 0 : index
    %c0_6 = arith.constant 0 : index
    %2 = vector.load %arg5[%c0_3, %c0_4, %c0_5, %c0_6] : memref<1x1x16x16xf32, #tpu.memory_space<vmem>>, vector<1x1x16x16xf32>
    %3 = vector.shape_cast %2 : vector<1x1x16x16xf32> to vector<1x16x16xf32>
    %4 = arith.addf %1, %3 : vector<1x16x16xf32>
    %c0_7 = arith.constant 0 : index
    %c0_8 = arith.constant 0 : index
    %c0_9 = arith.constant 0 : index
    %c0_10 = arith.constant 0 : index
    %5 = vector.load %arg6[%c0_7, %c0_8, %c0_9, %c0_10] : memref<1x1x16x16xf32, #tpu.memory_space<vmem>>, vector<1x1x16x16xf32>
    %6 = vector.shape_cast %5 : vector<1x1x16x16xf32> to vector<1x16x16xf32>
    %7 = arith.addf %4, %6 : vector<1x16x16xf32>
    %8 = vector.shape_cast %7 : vector<1x16x16xf32> to vector<16x16xf32>
    %c0_11 = arith.constant 0 : index
    %c0_12 = arith.constant 0 : index
    %9 = vector.load %arg2[%c0_11, %c0_12] : memref<16x64xf32, #tpu.memory_space<vmem>>, vector<16x64xf32>
    %cst = arith.constant dense<0.000000e+00> : vector<16x64xf32>
    %10 = tpu.matmul %8, %9, %cst {dimension_numbers = #tpu.dot_dimension_numbers<[1], [0], [0], [1], [0, 0, 1, 1], [], []>} : vector<16x16xf32>, vector<16x64xf32>, vector<16x64xf32> -> vector<16x64xf32>
    %11 = vector.shape_cast %10 : vector<16x64xf32> to vector<1x16x64xf32>
    %c0_13 = arith.constant 0 : index
    %c0_14 = arith.constant 0 : index
    %c0_15 = arith.constant 0 : index
    %12 = vector.load %arg3[%c0_13, %c0_14, %c0_15] : memref<1x1x64xf32, #tpu.memory_space<vmem>>, vector<1x1x64xf32>
    %13 = vector.broadcast %12 : vector<1x1x64xf32> to vector<1x16x64xf32>
    %14 = arith.mulf %11, %13 : vector<1x16x64xf32>
    %c0_16 = arith.constant 0 : index
    %c0_17 = arith.constant 0 : index
    %c0_18 = arith.constant 0 : index
    %c0_19 = arith.constant 0 : index
    %15 = vector.load %arg7[%c0_16, %c0_17, %c0_18, %c0_19] : memref<1x1x16x64xf32, #tpu.memory_space<vmem>>, vector<1x1x16x64xf32>
    %16 = vector.shape_cast %15 : vector<1x1x16x64xf32> to vector<1x16x64xf32>
    %17 = vector.shape_cast %14 : vector<1x16x64xf32> to vector<1x1x16x64xf32>
    tpu.vector_store %arg7[%c0_16, %c0_17, %c0_18, %c0_19], %17 {strides = array<i32>} : memref<1x1x16x64xf32, #tpu.memory_space<vmem>>, vector<1x1x16x64xf32>,
    return
  }
  func.func @transform_0(%arg0: i32, %arg1: i32) -> (i32, i32) {
    %c0_i32 = arith.constant 0 : i32
    %c0_i32_0 = arith.constant 0 : i32
    %c0_i32_1 = arith.constant 0 : i32
    return %c0_i32, %c0_i32_0 : i32, i32
  }
  func.func @transform_1(%arg0: i32, %arg1: i32) -> (i32, i32, i32) {
    %c0_i32 = arith.constant 0 : i32
    %c0_i32_0 = arith.constant 0 : i32
    %c0_i32_1 = arith.constant 0 : i32
    return %arg0, %c0_i32, %c0_i32_0 : i32, i32, i32
  }
  func.func @transform_2(%arg0: i32, %arg1: i32) -> (i32, i32, i32, i32) {
    %c0_i32 = arith.constant 0 : i32
    %c0_i32_0 = arith.constant 0 : i32
    %c0_i32_1 = arith.constant 0 : i32
    return %arg1, %arg0, %c0_i32, %c0_i32_0 : i32, i32, i32, i32
  }
  func.func @transform_3(%arg0: i32, %arg1: i32) -> (i32, i32, i32, i32) {
    %c0_i32 = arith.constant 0 : i32
    %c0_i32_0 = arith.constant 0 : i32
    %c0_i32_1 = arith.constant 0 : i32
    return %arg1, %arg0, %c0_i32, %c0_i32_0 : i32, i32, i32, i32
  }
  func.func @transform_4(%arg0: i32, %arg1: i32) -> (i32, i32, i32, i32) {
    %c0_i32 = arith.constant 0 : i32
    %c0_i32_0 = arith.constant 0 : i32
    %c0_i32_1 = arith.constant 0 : i32
    return %arg1, %arg0, %c0_i32, %c0_i32_0 : i32, i32, i32, i32
  }
  func.func @transform_5(%arg0: i32, %arg1: i32) -> (i32, i32, i32, i32) {
    %c0_i32 = arith.constant 0 : i32
    %c0_i32_0 = arith.constant 0 : i32
    %c0_i32_1 = arith.constant 0 : i32
    return %arg1, %arg0, %c0_i32, %c0_i32_0 : i32, i32, i32, i32
  }
}

</mosaic_0001>

<bundles_post_ra>
// kernel: tpu_custom_call.1
= control target key start
LH: loop header
LB: loop body
LE: loop exit
PB: predicated region body
PF: predicated region fallthrough
CT: control target
= control target key end

     0   :  { %s1631_s0 = inlined_call_operand.hbm [shape: f32[16,64], index: 0, kind: input, shape index: {}]   ;;  %s1632_s1 = inlined_call_operand.hbm [shape: f32[4,1,64], index: 1, kind: input, shape index: {}]   ;;  %s1633_s2 = inlined_call_operand.hbm [shape: f32[2,4,16,16], index: 2, kind: input, shape index: {}]   ;;  %s1634_s3 = inlined_call_operand.hbm [shape: f32[2,4,16,16], index: 3, kind: input, shape index: {}]   ;;  %s1635_s4 = inlined_call_operand.hbm [shape: f32[2,4,16,16], index: 4, kind: input, shape index: {}]   ;;  %s1636_s5 = inlined_call_operand.hbm [shape: f32[2,4,16,64], index: 5, kind: output, shape index: {}]  }
   0x1   :  { %1666 = sst [smem:[#allocation29_spill]] %s1632_s1 }
   0x2   :  { %1667 = sst [smem:[#allocation30_spill]] %s1634_s3 }
   0x3   :  { %1668 = sst [smem:[#allocation31_spill]] %s1636_s5 }
   0x4   :  { %10 = vsyncpa [#allocation3], 0 }
   0x5   :  { %11 = vsyncpa [#allocation6], 0 }
   0x6   :  { %13 = vsyncpa [#allocation6 + $0x1], 0 }
   0x7   :  { %14 = vsyncpa [#allocation9], 0 }
   0x8   :  { %16 = vsyncpa [#allocation9 + $0x1], 0 }
   0x9   :  { %17 = vsyncpa [#allocation4], 0 }
   0xa   :  { %19 = vsyncpa [#allocation4 + $0x1], 0  ;;  %s1186_s18 = smov 0   ;;  %s1188_s19 = smov 0  }
   0xb   :  { %s1190_s20 = smov 0   ;;  %s1192_s21 = smov 0  }
   0xc   :  { %s1194_s22 = smov 0   ;;  %s1196_s23 = smov 0  }
   0xd   :  { %s1198_s24 = smov 0   ;;  %s1200_s25 = smov 0  }
   0xe   :  { %s1202_s26 = smov 0   ;;  %s1204_s27 = smov 0  }
   0xf   :  { %s1206_s28 = smov 0  }
  0x10 LB: > { %1669 = sst [smem:[#allocation17_spill]] %s1104_s18  ;;  %s683_s29 = sadd.s32 4294967294, %s1144_s28   ;;  %s1144_s28 = sphi %s1206_s28, %s25_s28   ;;  %s1140_s27 = sphi %s1204_s27, %s1722_s27   ;;  %s1136_s26 = sphi %s1202_s26, %s1721_s26   ;;  %s1132_s25 = sphi %s1200_s25, %s1720_s25   ;;  %s1128_s24 = sphi %s1198_s24, %s1719_s24   ;;  %s1124_s23 = sphi %s1196_s23, %s1718_s23   ;;  %s1120_s22 = sphi %s1194_s22, %s1726_s22   ;;  %s1116_s21 = sphi %s1192_s21, %s1725_s21   ;;  %s1112_s20 = sphi %s1190_s20, %s1716_s20   ;;  %s1108_s19 = sphi %s1188_s19, %s1724_s19   ;;  %s1104_s18 = sphi %s1186_s18, %s1723_s18  }
  0x11   : > { %1670 = sst [smem:[#allocation18_spill]] %s1112_s20  ;;  %s34_s30 = sadd.s32 1, %s1136_s26 }
  0x12   : > { %1671 = sst [smem:[#allocation19_spill]] %s1124_s23  ;;  %p35_p0 = scmp.ge.s32.totalorder %s34_s30, 2 }
  0x13   : > { %1672 = sst [smem:[#allocation20_spill]] %s1136_s26  ;;  %s37_s6 = sadd.s32 1, %s1140_s27 }
  0x14   : > { %1673 = sst [smem:[#allocation21_spill]] %s1140_s27  ;;  %s65_s7 = sadd.s32 1, %s1124_s23 }
  0x15   : > { %1674 = sst [smem:[#allocation22_spill]] %s1144_s28  ;;  %p72_p1 = scmp.ne.s32.totalorder %s1124_s23, %s1120_s22 }
  0x16   : > { %s1728_s30 = smov (%p35_p0, %s34_s30), 0  ;;  %s1730_s6 = smov (!%p35_p0, %s37_s6), %s1140_s27 }
  0x17   : > { %1675 = sst [smem:[#allocation23_spill]] %s1728_s30  ;;  %p73_p2 = scmp.eq.s32.totalorder %s1144_s28, 0 }
  0x18   : > { %p39_p4 = scmp.ge.s32.totalorder %s1730_s6, 4  ;;  %s88_s8 = ssub.s32 %s1136_s26, %s1728_s30 }
  0x19   : > { %p1257_p5 = por %p73_p2, %p72_p1  ;;  %s93_s10 = sadd.s32 1, %s1112_s20 }
  0x1a   : > { %s1732_s6 = smov (%p39_p4, %s1730_s6), 0  ;;  %p1639_p6 = scmp.ne.s32.totalorder %s1112_s20, %s1108_s19 }
  0x1b   : > { %1677 = sst [smem:[#allocation24_spill]] %s1732_s6  ;;  %p1640_p7 = scmp.ne.s32.totalorder %s1108_s19, %s1104_s18 }
  0x1c   : > { %s62_s11 = ssub.s32 %s1140_s27, %s1732_s6  ;;  %p194_p8 = scmp.eq.s32.totalorder %s683_s29, 7 }
  0x1d   : > { %p63_p9 = scmp.eq.s32.totalorder %s62_s11, 0  ;;  %s90_s12 = sor.u32 %s88_s8, %s62_s11 }
  0x1e   : > { %p91_p10 = scmp.eq.s32.totalorder %s90_s12, 0  ;;  %p1275_p11 = por %p1639_p6, %p73_p2 }
  0x1f   : > { %s1280_s14 = scalar_select %p63_p9, %s1124_s23, %s65_s7  }
  0x20   : > { %s1283_s15 = scalar_select %p91_p10, %s1112_s20, %s93_s10  }
  0x21   : > { %1679 = sst [smem:[#allocation25_spill]] %s1280_s14  ;;  %p1288_p12 = por %p194_p8, %p1640_p7 }
  0x22   : > { %1680 = sst [smem:[#allocation26_spill]] %s1283_s15  ;;  %p766_p13 = scmp.lt.s32.totalorder %s1144_s28, 8 }
  0x23   : > { %s1681_s16 = scalar_select %p1288_p12, 1, 0 }
  0x24   : > { %s1641_s17 = sand.u32 1, %s1144_s28   ;;  %s229_s29 = sand.u32 1, %s1124_s23  }
  0x25   : > { %1682 = sst [smem:[#allocation27_spill]] %s1681_s16  ;;  %s687_s8 = sshll.u32 %s1140_s27, 4 }
  0x26   : > { %s1683_s1 = sld [smem:[#allocation29_spill]]  ;;  %s230_s7 = scalar_lea.vmem [#allocation5], %s229_s29 }
  0x27   : > { %s237_s10 = sshll.u32 %s230_s7, 4  ;;  %p1305_p0 = pnand %p766_p13, %p1257_p5  ;;  %s1301_s10 = int_to_ptr.vmem [resolvable:$true] %s237_s10 }
  0x28   : > { %p1311_p1 = pnand %p766_p13, %p1275_p11 }
  0x29   : > { %p864_p4 = pneg %p1305_p0 }
  0x2a   : > { %s1685_s11 = scalar_select %p1311_p1, 1, 0 }
  0x2c   : > { %s1299_s6 = scalar_lea.hbm %s1683_s1, %s687_s8  ;;  %s1317_s8 = scalar_lea.sflag [#allocation6], %s1641_s17 }
  0x2d   : > { %s862_s12 = scalar_lea.hbm %s1299_s6, 16  ;;  %s867_s13 = scalar_lea.hbm %s1683_s1, 64 }
  0x2e   : > { %p863_p2 = scmp.ne.s32.totalorder %s1299_s6, %s862_s12  ;;  %p868_p9 = scmp.lt.u32.totalorder %s1299_s6, %s1683_s1 }
  0x2f   : > { %p869_p10 = scmp.lt.u32.totalorder %s867_s13, %s862_s12  ;;  %p871_p13 = scmp.lt.u32.totalorder %s862_s12, %s1299_s6 }
  0x30   : > { %p865_p5 = pnand %p864_p4, %p863_p2 }
  0x31   : > { %p870_p11 = por %p869_p10, %p868_p9 }
  0x32   : > { %p866_p8 = pneg %p865_p5 }
  0x33   : > { %p872_p6 = por %p871_p13, %p870_p11 }
  0x35   : > { %p873_p7 = pnand %p872_p6, %p866_p8 }
  0x37   : > { %876 = shalt.err (!%p873_p7)
}
  0x38   : > { %s877_s17 = scalar_lea.vmem %s1301_s10, 16  ;;  %s1146_s9 = smov [#allocation5]  }
  0x39   : > { %p878_p2 = scmp.ne.s32.totalorder %s1301_s10, %s877_s17  ;;  %s882_s29 = sshll.u32 %s1146_s9, 4  ;;  %s883_s29 = int_to_ptr.vmem [resolvable:$false] %s882_s29 }
  0x3a   : > { %s884_s14 = scalar_lea.vmem %s883_s29, 32  ;;  %p885_p12 = scmp.lt.s32.totalorder %s1301_s10, %s883_s29 }
  0x3b   : > { %p880_p5 = pnand %p878_p2, %p864_p4  ;;  %p886_p9 = scmp.lt.s32.totalorder %s884_s14, %s877_s17 }
  0x3d   : > { %p881_p3 = pneg %p880_p5  ;;  %p887_p10 = por %p886_p9, %p885_p12 }
  0x3f   : > { %p888_p11 = pnand %p887_p10, %p881_p3 }
  0x41   : > { %891 = shalt.err (!%p888_p11)
}
  0x42   : > { %751 = dma.hbm_to_vmem [thread:$0]  (!%p1305_p0), %s1299_s6, 16, %s1301_s10, %s1317_s8  }
  0x43   : > { %s246_s12 = sand.u32 1, %s1112_s20   ;;  %s689_s13 = sshll.u32 %s1140_s27, 1 }
  0x44   : > { %s1347_s7 = sshll.u32 %s246_s12, 4  ;;  %s690_s17 = sshll.u32 %s1136_s26, 3 }
  0x45   : > { %s254_s9 = sadd.s32 %s690_s17, %s689_s13  ;;  %s271_s30 = scalar_lea.vmem [#allocation8], %s1347_s7 }
  0x46   : > { %s1350_s29 = sshll.u32 %s254_s9, 7  ;;  %s280_s14 = sshll.u32 %s271_s30, 4  ;;  %s1359_s14 = int_to_ptr.vmem [resolvable:$true] %s280_s14 }
  0x47   : > { %s1686_s3 = sld [smem:[#allocation30_spill]]  ;;  %s1687_s6 = sand.u32 1, %s1144_s28  }
  0x48   : > { %s1363_s10 = scalar_lea.sflag [#allocation9], %s1687_s6  ;;  %p1369_p6 = pneg %p1311_p1 }
  0x4a   : > { %s1688_s13 = scalar_select %p1369_p6, 1, 0 }
  0x4d   : > { %s1357_s15 = scalar_lea.hbm %s1686_s3, %s1350_s29  ;;  %s897_s17 = scalar_lea.hbm %s1686_s3, 2048 }
  0x4e   : > { %s892_s12 = scalar_lea.hbm %s1357_s15, 256  ;;  %p898_p0 = scmp.lt.u32.totalorder %s1357_s15, %s1686_s3 }
  0x4f   : > { %p893_p3 = scmp.ne.s32.totalorder %s1357_s15, %s892_s12  ;;  %p899_p4 = scmp.lt.u32.totalorder %s897_s17, %s892_s12 }
  0x50   : > { %p901_p13 = scmp.lt.u32.totalorder %s892_s12, %s1357_s15 }
  0x51   : > { %p895_p7 = pnand %p1369_p6, %p893_p3  ;;  %p900_p8 = por %p899_p4, %p898_p0 }
  0x53   : > { %p896_p12 = pneg %p895_p7  ;;  %p902_p2 = por %p901_p13, %p900_p8 }
  0x55   : > { %p903_p5 = pnand %p902_p2, %p896_p12 }
  0x57   : > { %906 = shalt.err (!%p903_p5)
}
  0x58   : > { %s907_s6 = scalar_lea.vmem %s1359_s14, 256  ;;  %s1147_s1 = smov [#allocation8]  }
  0x59   : > { %p908_p9 = scmp.ne.s32.totalorder %s1359_s14, %s907_s6  ;;  %s912_s23 = sshll.u32 %s1147_s1, 4  ;;  %s913_s23 = int_to_ptr.vmem [resolvable:$false] %s912_s23 }
  0x5a   : > { %s914_s9 = scalar_lea.vmem %s913_s23, 512  ;;  %p915_p3 = scmp.lt.s32.totalorder %s1359_s14, %s913_s23 }
  0x5b   : > { %p910_p10 = pnand %p908_p9, %p1369_p6  ;;  %p916_p7 = scmp.lt.s32.totalorder %s914_s9, %s907_s6 }
  0x5d   : > { %p911_p11 = pneg %p910_p10  ;;  %p917_p0 = por %p916_p7, %p915_p3 }
  0x5f   : > { %p918_p4 = pnand %p917_p0, %p911_p11 }
  0x61   : > { %921 = shalt.err (!%p918_p4)
}
  0x62   : > { %s1643_s12 = smov 128   ;;  %s1645_s17 = smov 8  }
  0x63   : > { %757 = dma.hbm_to_vmem [thread:$0]  (!%p1311_p1), %s1357_s15, 256, %s1359_s14, %s1363_s10, %s1643_s12, %s1643_s12, %s1645_s17  }
  0x64   : > { %s1397_s30 = sadd.s32 4294967295, %s1144_s28   ;;  %p684_p12 = scmp.ge.s32.totalorder %s1144_s28, 1 }
  0x65   : > { %p1657_p8 = scmp.eq.s32.totalorder %s1397_s30, 0  ;;  %p188_p13 = scmp.eq.s32.totalorder %s1397_s30, 7 }
  0x66   : > { %p201_p2 = scmp.lt.s32.totalorder %s1144_s28, 9  ;;  %p1689_p5 = scmp.ne.s32.totalorder %s1120_s22, %s1116_s21 }
  0x67   : > { %p1691_p10 = scmp.ne.s32.totalorder %s1108_s19, %s1104_s18  ;;  %p1693_p3 = scmp.ne.s32.totalorder %s1112_s20, %s1108_s19 }
  0x68   : > { %p1408_p9 = por %p1657_p8, %p1689_p5  ;;  %p1428_p0 = pnand %p684_p12, %p201_p2 }
  0x69   : > { %p1417_p11 = por %p1691_p10, %p1657_p8  ;;  %p1424_p7 = por %p188_p13, %p1693_p3 }
  0x6a   : > { %s1690_s6 = scalar_select %p1408_p9, 1, 0 }
  0x6b   : > { %s1692_s15 = scalar_select %p1417_p11, 1, 0 }
  0x6c   : > { %s1694_s14 = scalar_select %p1424_p7, 1, 0 }
  0x6d   : > { %s1696_s1 = scalar_select %p1428_p0, 1, 0 }
  0x6e   : > { %1695 = sst [smem:[#allocation28_spill]] %s1694_s14  ;;  %p744_p4 = pneg %p1428_p0 }
  0x6f   : > { %s1150_s21 = smov [#allocation2]   ;;  %s1438_s17 = scalar_lea.hbm %s1633_s2, %s1350_s29 }
  0x70   : > { %s213_s23 = sshll.u32 %s1150_s21, 4  ;;  %p1442_p13 = pnand %p744_p4, %p1657_p8  ;;  %s214_s23 = int_to_ptr.vmem [resolvable:$true] %s213_s23 }
  0x71   : > { %s248_s27 = scalar_lea.vmem [#allocation7], %s1347_s7  ;;  %s1453_s21 = scalar_lea.hbm %s1635_s4, %s1350_s29 }
  0x72   : > { %s257_s26 = sshll.u32 %s248_s27, 4  ;;  %s922_s12 = scalar_lea.hbm %s1631_s0, 256  ;;  %s1447_s26 = int_to_ptr.vmem [resolvable:$true] %s257_s26 }
  0x73   : > { %p923_p12 = scmp.ne.s32.totalorder %s1631_s0, %s922_s12  ;;  %p924_p2 = pneg %p1442_p13 }
  0x74   : > { %p929_p3 = scmp.lt.u32.totalorder %s922_s12, %s1631_s0 }
  0x75   : > { %p925_p5 = pnand %p924_p2, %p923_p12 }
  0x77   : > { %p926_p10 = pneg %p925_p5 }
  0x79   : > { %p931_p4 = pnand %p929_p3, %p926_p10 }
  0x7b   : > { %934 = shalt.err (!%p931_p4)
}
  0x7c   : > { %s935_s20 = scalar_lea.vmem %s214_s23, 256  ;;  %p943_p9 = scmp.lt.s32.totalorder %s214_s23, %s214_s23 }
  0x7d   : > { %p936_p8 = scmp.ne.s32.totalorder %s214_s23, %s935_s20  ;;  %p944_p0 = scmp.lt.s32.totalorder %s935_s20, %s935_s20 }
  0x7f   : > { %p938_p7 = pnand %p936_p8, %p924_p2  ;;  %p945_p1 = por %p944_p0, %p943_p9 }
  0x81   : > { %p939_p11 = pneg %p938_p7 }
  0x83   : > { %p946_p6 = pnand %p945_p1, %p939_p11 }
  0x85   : > { %949 = shalt.err (!%p946_p6)
}
  0x86   : > { %s1698_s5 = smov 8   ;;  %s1699_s18 = smov 128  }
  0x87   : > { %747 = dma.hbm_to_vmem [thread:$0]  (!%p1442_p13), %s1631_s0, 256, %s214_s23, [#allocation3], %s1699_s18, %s1699_s18, %s1698_s5  }
  0x88   : > { %s950_s29 = scalar_lea.hbm %s1438_s17, 256  ;;  %p1700_p7 = scmp.ne.s32.totalorder %s1688_s13, 0 }
  0x89   : > { %p951_p8 = scmp.ne.s32.totalorder %s1438_s17, %s950_s29  ;;  %s955_s3 = scalar_lea.hbm %s1633_s2, 2048 }
  0x8a   : > { %p956_p6 = scmp.lt.u32.totalorder %s1438_s17, %s1633_s2  ;;  %p957_p11 = scmp.lt.u32.totalorder %s955_s3, %s950_s29 }
  0x8b   : > { %p953_p9 = pnand %p951_p8, %p1700_p7  ;;  %p959_p12 = scmp.lt.u32.totalorder %s950_s29, %s1438_s17 }
  0x8c   : > { %p958_p0 = por %p957_p11, %p956_p6 }
  0x8d   : > { %p954_p1 = pneg %p953_p9 }
  0x8e   : > { %p960_p2 = por %p959_p12, %p958_p0 }
  0x90   : > { %p961_p5 = pnand %p960_p2, %p954_p1 }
  0x92   : > { %964 = shalt.err (!%p961_p5)
}
  0x93   : > { %s965_s23 = scalar_lea.vmem %s1447_s26, 256  ;;  %s1151_s20 = smov [#allocation7]  }
  0x94   : > { %p966_p13 = scmp.ne.s32.totalorder %s1447_s26, %s965_s23  ;;  %s970_s28 = sshll.u32 %s1151_s20, 4  ;;  %s971_s28 = int_to_ptr.vmem [resolvable:$false] %s970_s28 }
  0x95   : > { %s972_s16 = scalar_lea.vmem %s971_s28, 512  ;;  %p973_p4 = scmp.lt.s32.totalorder %s1447_s26, %s971_s28 }
  0x96   : > { %p968_p10 = pnand %p966_p13, %p1700_p7  ;;  %p974_p8 = scmp.lt.s32.totalorder %s972_s16, %s965_s23 }
  0x98   : > { %p969_p3 = pneg %p968_p10  ;;  %p975_p9 = por %p974_p8, %p973_p4 }
  0x9a   : > { %p976_p6 = pnand %p975_p9, %p969_p3 }
  0x9c   : > { %979 = shalt.err (!%p976_p6)
}
  0x9d   : > { %p1701_p1 = scmp.ne.s32.totalorder %s1685_s11, 0  ;;  %s294_s29 = scalar_lea.vmem [#allocation10], %s1347_s7 }
  0x9e   : > { %s303_s14 = sshll.u32 %s294_s29, 4  ;;  %s980_s12 = scalar_lea.hbm %s1453_s21, 256  ;;  %s1500_s14 = int_to_ptr.vmem [resolvable:$true] %s303_s14 }
  0x9f   : > { %754 = dma.hbm_to_vmem [thread:$0]  (!%p1701_p1), %s1438_s17, 256, %s1447_s26, %s1317_s8, %s1699_s18, %s1699_s18, %s1698_s5  }
  0xa0   : > { %p981_p11 = scmp.ne.s32.totalorder %s1453_s21, %s980_s12  ;;  %s985_s27 = scalar_lea.hbm %s1635_s4, 2048 }
  0xa1   : > { %p986_p2 = scmp.lt.u32.totalorder %s1453_s21, %s1635_s4  ;;  %p987_p5 = scmp.lt.u32.totalorder %s985_s27, %s980_s12 }
  0xa2   : > { %p983_p0 = pnand %p981_p11, %p1700_p7  ;;  %p989_p10 = scmp.lt.u32.totalorder %s980_s12, %s1453_s21 }
  0xa3   : > { %p988_p13 = por %p987_p5, %p986_p2 }
  0xa4   : > { %p984_p12 = pneg %p983_p0 }
  0xa5   : > { %p990_p3 = por %p989_p10, %p988_p13 }
  0xa7   : > { %p991_p4 = pnand %p990_p3, %p984_p12 }
  0xa9   : > { %994 = shalt.err (!%p991_p4)
}
  0xaa   : > { %s995_s26 = scalar_lea.vmem %s1500_s14, 256  ;;  %s1152_s8 = smov [#allocation10]  }
  0xab   : > { %p996_p8 = scmp.ne.s32.totalorder %s1500_s14, %s995_s26  ;;  %s1000_s7 = sshll.u32 %s1152_s8, 4  ;;  %s1001_s7 = int_to_ptr.vmem [resolvable:$false] %s1000_s7 }
  0xac   : > { %s1002_s17 = scalar_lea.vmem %s1001_s7, 512  ;;  %p1003_p11 = scmp.lt.s32.totalorder %s1500_s14, %s1001_s7 }
  0xad   : > { %p998_p9 = pnand %p996_p8, %p1700_p7  ;;  %p1004_p0 = scmp.lt.s32.totalorder %s1002_s17, %s995_s26 }
  0xaf   : > { %p999_p6 = pneg %p998_p9  ;;  %p1005_p2 = por %p1004_p0, %p1003_p11 }
  0xb1   : > { %p1006_p5 = pnand %p1005_p2, %p999_p6 }
  0xb3   : > { %1009 = shalt.err (!%p1006_p5)
}
  0xb4   : > { %760 = dma.hbm_to_vmem [thread:$0]  (!%p1701_p1), %s1453_s21, 256, %s1500_s14, %s1363_s10, %s1699_s18, %s1699_s18, %s1698_s5  }
  0xb5   : > { %p1702_p7 = scmp.ne.s32.totalorder %s1696_s1, 0 }
  0xb6   : > { %p1703_p12 = scmp.eq.s32.totalorder (!%p1702_p7), %s1397_s30, 0 }
  0xb7   : > { %315 = sbr.rel (%p1702_p7) target bundleno = 440 (0x1b8), region = 40 }
  0xbe   : > { %1083 = dma.done.wait (%p1703_p12), [#allocation3], 256   ;;  %p1704_p13 = pmov %p1703_p12 }
  0xbf   : > { %s321_s11 = sand.u32 1, %s1397_s30   ;;  %s323_s13 = sand.u32 1, %s1120_s22  }
  0xc0   : > { %1085 = vsyncadd (%p1704_p13), [#allocation3], 4294967040  ;;  %s322_s28 = scalar_lea.sflag [#allocation6], %s321_s11  ;;  %s1535_s16 = scalar_lea.vmem [#allocation5], %s323_s13 }
  0xc1   : > { %p1705_p10 = scmp.ne.s32.totalorder %s1690_s6, 0 }
  0xc3   : > { %1087 = dma.done.wait (%p1705_p10), %s322_s28, 16  }
  0xc4   : > { %1089 = vsyncadd (%p1705_p10), %s322_s28, 4294967280  ;;  %s331_s10 = sand.u32 1, %s1108_s19   ;;  %p1706_p1 = scmp.ne.s32.totalorder %s1692_s15, 0 }
  0xc5   : > { %s1544_s1 = sshll.u32 %s331_s10, 4 }
  0xc6   : > { %s333_s21 = scalar_lea.vmem [#allocation7], %s1544_s1 }
  0xc7   : > { %1091 = dma.done.wait (%p1706_p1), %s322_s28, 256  }
  0xc8   : > { %1093 = vsyncadd (%p1706_p1), %s322_s28, 4294967040  ;;  %s339_s30 = scalar_lea.sflag [#allocation9], %s321_s11  ;;  %s342_s5 = scalar_lea.vmem [#allocation8], %s1544_s1 }
  0xc9   : > { %1095 = dma.done.wait (%p1706_p1), %s339_s30, 512  }
  0xca   : > { %1097 = vsyncadd (%p1706_p1), %s339_s30, 4294966784  ;;  %v402_v0 = vld [vmem:[#allocation2] sm:$0xff]  ;;  %v403_v1 = vld [vmem:[#allocation2 + $0x8] sm:$0xff]  ;;  %s351_s6 = scalar_lea.vmem [#allocation10], %s1544_s1  ;;  %vm404_vm0 = vcmask 130048   ;;  %s710_s15 = sshll.u32 %s1132_s25, 1 }
  0xcb   : > { %v392_v2 = vld [vmem:[%s333_s21] sm:$0xff]  ;;  %v726_v3 = vpack.c.bf16 %v403_v1, %v402_v0  ;;  %v393_v4 = vld [vmem:[%s333_s21 + $0x8] sm:$0xff]  ;;  %s711_s18 = sshll.u32 %s1128_s24, 3  ;;  %s391_s14 = scalar_lea.vmem [#allocation11], %s1544_s1  ;;  %vm495_vm1 = vcmask 523264  }
  0xcc   : > { %v394_v5 = vld [vmem:[%s342_s5] sm:$0xff]  ;;  %v395_v6 = vld [vmem:[%s342_s5 + $0x8] sm:$0xff]  ;;  %s511_s29 = sadd.s32 %s711_s18, %s710_s15  ;;  %s1707_s12 = sld [smem:[#allocation28_spill]] }
  0xcd   : > { %v396_v7 = vadd.f32 %v394_v5, %v392_v2  ;;  %v397_v8 = vadd.f32 %v395_v6, %v393_v4  ;;  %v398_v9 = vld [vmem:[%s351_s6] sm:$0xff]  ;;  %v399_v10 = vld [vmem:[%s351_s6 + $0x8] sm:$0xff]  ;;  %727 = vmatprep.subr.bf16.mxu0 %v726_v3  ;;  %s514_s3 = sshll.u32 %s391_s14, 4  ;;  %s712_s9 = sshll.u32 %s511_s29, 7  ;;  %s1561_s3 = int_to_ptr.vmem [resolvable:$true] %s514_s3 }
  0xce   : > { %729 = vmatpush3.bf16.msra.mxu0 %v726_v3  ;;  %v708_v13 = vld [vmem:[%s1535_s16] ss:$0 sm:$0xff]  ;;  %s1708_s25 = sld [smem:[#allocation31_spill]]  ;;  %s1570_s24 = scalar_lea.sflag [#allocation4], %s331_s10 }
  0xcf   : > { %v400_v11 = vadd.f32 %v398_v9, %v396_v7  ;;  %v401_v12 = vadd.f32 %v399_v10, %v397_v8  ;;  %s1010_s26 = scalar_lea.vmem %s1561_s3, 256  ;;  %s1153_s7 = smov [#allocation11]  }
  0xd0   : > { %p1011_p3 = scmp.ne.s32.totalorder %s1561_s3, %s1010_s26  ;;  %s1014_s17 = sshll.u32 %s1153_s7, 4  ;;  %s1015_s17 = int_to_ptr.vmem [resolvable:$false] %s1014_s17 }
  0xd1   : > { %723 = vmatprep.mubr.msk.f32.mxu0 %vm404_vm0, %v400_v11  ;;  %s1016_s11 = scalar_lea.vmem %s1015_s17, 512  ;;  %p1017_p6 = scmp.lt.s32.totalorder %s1561_s3, %s1015_s17 }
  0xd2   : > { %724 = vmatmul.mubr.msk.f32.vlgmr.msra.gmra.mrb[0].mxu0 %vm404_vm0, %v401_v12  ;;  %p1710_p4 = scmp.ne.s32.totalorder %s1707_s12, 0  ;;  %p1018_p11 = scmp.lt.s32.totalorder %s1016_s11, %s1010_s26 }
  0xd4   : > { %s1709_s8 = smov %s1708_s25  ;;  %s1566_s20 = scalar_lea.hbm %s1708_s25, %s712_s9 }
  0xd5   : > { %p1012_p8 = pnand %p1011_p3, %p1710_p4  ;;  %p1019_p0 = por %p1018_p11, %p1017_p6 }
  0xd7   : > { %p1013_p9 = pneg %p1012_p8 }
  0xd9   : > { %p1020_p2 = pnand %p1019_p0, %p1013_p9 }
 0x1a5   : > { %v725_v14 = vpop.f32.mrb[0].mxu0 }
 0x1a6   : > { %v494_v15 = vmul.f32 %v725_v14, %v708_v13  ;;  %v477_v16 = vpop.f32.mrb[1].mxu0 }
 0x1a7   : > { %v493_v17 = vmul.f32 %v708_v13, %v477_v16 }
 0x1a8   : > { %497 = vst.msk [vmem:[%s391_s14 + $0x8] sm:$0xff] %vm495_vm1, %v494_v15 }
 0x1a9   : > { %496 = vst.msk [vmem:[%s391_s14] sm:$0xff] %vm495_vm1, %v493_v17 }
 0x1aa   : > { %1023 = shalt.err (!%p1020_p2)
}
 0x1ab   : > { %s1024_s13 = scalar_lea.hbm %s1566_s20, 256  ;;  %s1028_s10 = scalar_lea.hbm %s1709_s8, 2048 }
 0x1ac   : > { %p1025_p5 = scmp.ne.s32.totalorder %s1566_s20, %s1024_s13  ;;  %p1029_p13 = scmp.lt.u32.totalorder %s1566_s20, %s1709_s8 }
 0x1ad   : > { %p1030_p10 = scmp.lt.u32.totalorder %s1028_s10, %s1024_s13  ;;  %p1032_p3 = scmp.lt.u32.totalorder %s1024_s13, %s1566_s20 }
 0x1ae   : > { %p1026_p7 = pnand %p1025_p5, %p1710_p4 }
 0x1af   : > { %p1031_p1 = por %p1030_p10, %p1029_p13 }
 0x1b0   : > { %p1027_p12 = pneg %p1026_p7 }
 0x1b1   : > { %p1033_p8 = por %p1032_p3, %p1031_p1 }
 0x1b3   : > { %p1034_p9 = pnand %p1033_p8, %p1027_p12 }
 0x1b5   : > { %1037 = shalt.err (!%p1034_p9)
}
 0x1b6   : > { %s1154_s30 = smov 128   ;;  %s1155_s5 = smov 8  }
 0x1b7   : > { %742 = dma.vmem_to_hbm [thread:$0]  (%p1710_p4), %s1561_s3, 256, %s1566_s20, %s1570_s24, %s1154_s30, %s1154_s30, %s1155_s5  }
 0x1b8 PF: > { %s1711_s6 = sld [smem:[#allocation22_spill]]  ;;  %s1712_s15 = sld [smem:[#allocation17_spill]] }
 0x1b9   : > { %s1713_s18 = sld [smem:[#allocation27_spill]] }
 0x1be   : > { %p768_p6 = scmp.ge.s32.totalorder %s1711_s6, 2  ;;  %s529_s29 = sand.u32 1, %s1712_s15  }
 0x1bf   : > { %p1714_p11 = scmp.ne.s32.totalorder %s1713_s18, 0  ;;  %s530_s14 = scalar_lea.sflag [#allocation4], %s529_s29 }
 0x1c1   : > { %p762_p0 = pnand %p768_p6, %p1714_p11 }
 0x1c3   : > { %1099 = dma.done.wait (!%p762_p0), %s530_s14, 256  }
 0x1c4   : > { %1101 = vsyncadd (!%p762_p0), %s530_s14, 4294967040  ;;  %s25_s28 = sadd.s32 1, %s1711_s6   ;;  %s1715_s9 = sld [smem:[#allocation18_spill]] }
 0x1c5   : > { %p22_p2 = scmp.ge.s32.totalorder %s25_s28, 10   ;;  %s1716_s20 = sld [smem:[#allocation26_spill]] }
 0x1c6   : > { %s1717_s12 = sld [smem:[#allocation19_spill]]  ;;  %s1718_s23 = sld [smem:[#allocation25_spill]] }
 0x1c7   : > { %s1719_s24 = sld [smem:[#allocation20_spill]]  ;;  %s1720_s25 = sld [smem:[#allocation21_spill]] }
 0x1c8   : > { %s1721_s26 = sld [smem:[#allocation23_spill]]  ;;  %s1722_s27 = sld [smem:[#allocation24_spill]] }
 0x1c9   : > { %s1723_s18 = smov %s1108_s19  ;;  %s1725_s21 = smov %s1120_s22 }
 0x1ca   : > { %s1724_s19 = smov %s1715_s9  ;;  %24 = sbr.rel (!%p22_p2) target bundleno = 16 (0x10), region = 125 }
 0x1cc   : > { %s1726_s22 = smov %s1717_s12 }
 0x1d1   :  { %535 = vsyncpa [#allocation3], 1 }
 0x1d2   :  { %537 = vsyncpa [#allocation3 + $0x1], 1 }
 0x1d3   :  { %538 = vsyncpa [#allocation6], 1 }
 0x1d4   :  { %540 = vsyncpa [#allocation6 + $0x1], 1 }
 0x1d5   :  { %541 = vsyncpa [#allocation9], 1 }
 0x1d6   :  { %543 = vsyncpa [#allocation9 + $0x1], 1 }
 0x1d7   :  { %544 = vsyncpa [#allocation4], 1 }
 0x1d8   :  { %546 = vsyncpa [#allocation4 + $0x1], 1 }

</bundles_post_ra>
